<compile_context>
chip_gen: v5e
topology: v5e:2x2
jax: 0.10.0
libtpu: 0.0.40
codegen_flags: <defaults>
</compile_context>

<pallas_src>
import functools
import math

import jax
import jax.numpy as jnp
from jax import lax
from jax.experimental import pallas as pl
from jax.experimental.pallas import tpu as pltpu
import numpy as np

EPS = 1e-5


def _single_layer_kernel(x_ref, scale_ref, shift_ref, w_ref, out_ref, *, B, H, WC):
    # x_ref:     (B, H, W*C)          NHWC input, (W, C) flattened into lanes
    # scale_ref: (1, W*C)             folded BN scale, tiled along W
    # shift_ref: (1, W*C)             folded BN shift, tiled along W
    # w_ref:     (4*W*C, W*Ctot_pad)  [ky=0 | ky=1 | ky=2 | x-passthrough] fused weight
    # out_ref:   (B, H, W*Ctot_pad)   fused, lane-dense [x | conv | zero-pad] output
    x = x_ref[...]                                            # (B, H, WC)
    act = jnp.maximum(x * scale_ref[0] + shift_ref[0], 0.0)   # BN + ReLU

    # Vertical conv taps: row h of act_dn holds act[h-1], row h of act_up holds
    # act[h+1]; boundary rows are the conv's zero padding.  Horizontal padding
    # is handled structurally (missing taps in the Toeplitz weight).
    zrow = jnp.zeros((B, 1, WC), jnp.float32)
    act_dn = jnp.concatenate([zrow, act[:, :H - 1, :]], axis=1)
    act_up = jnp.concatenate([act[:, 1:, :], zrow], axis=1)

    # One batched matmul: M = B*H, K = 4*W*C, N = W*Ctot_pad.  Column
    # w*Ctot_pad + j already holds x channel j (j<C) or conv channel j-C
    # (C<=j<C+Cout): the torch.cat is fused and the store is lane-dense.
    ops = jnp.concatenate([act_dn, act, act_up, x], axis=-1)  # (B, H, 4*WC)
    acc = jnp.dot(ops.reshape(B * H, 4 * WC), w_ref[...],
                  preferred_element_type=jnp.float32)
    out_ref[...] = acc.reshape(out_ref.shape).astype(out_ref.dtype)


@functools.lru_cache(maxsize=None)
def _fused_weight_indices(C, Cout, W, Ctot_pad):
    """Gather indices mapping w_ext = [conv_w.ravel(), 0.0, 1.0] -> fused weight.

    Rows: three W*C-row Toeplitz blocks (ky = 0,1,2; row = u*C + ci with u the
    input column) followed by a W*C-row raw-x passthrough block.
    Cols: wpos*Ctot_pad + j, with j<C copying x channel j, C<=j<C+Cout the conv
    output channel j-C, and j>=C+Cout zero lane-padding.
    """
    WC = W * C
    nw = Cout * C * 9
    ZERO, ONE = nw, nw + 1
    idx = np.full((4 * WC, W * Ctot_pad), ZERO, dtype=np.int32)
    for ky in range(3):
        for u in range(W):
            for ci in range(C):
                r = ky * WC + u * C + ci
                for kx in range(3):
                    wpos = u - kx + 1   # tap kx of output col wpos reads input col u
                    if 0 <= wpos < W:
                        base = wpos * Ctot_pad + C
                        for co in range(Cout):
                            idx[r, base + co] = ((co * C + ci) * 3 + ky) * 3 + kx
    for wpos in range(W):
        for ci in range(C):
            idx[3 * WC + wpos * C + ci, wpos * Ctot_pad + ci] = ONE
    return idx


def _tensorcores_per_device():
    """Best-effort TensorCores-per-device (v7x/v5p/v4 pack 2 TCs per device)."""
    try:
        kind = jax.devices()[0].device_kind.lower()
    except Exception:
        return 1
    return 2 if any(tag in kind for tag in ("v7", "v5p", "v4")) else 1


def single_layer_forward(x_nchw, gamma, beta, w_oihw, *, block_batch=None):
    """Forward of DenseNet SingleLayer. Input/output are NCHW float32."""
    N, C, H, W = x_nchw.shape
    Cout = w_oihw.shape[0]
    Ctot = C + Cout
    WC = W * C

    # Pad the fused channel count so the output last dim is a multiple of 128
    # lanes (unmasked stores); fall back to no padding for awkward W.
    mult = 128 // math.gcd(W, 128)
    Ctot_pad = -(-Ctot // mult) * mult
    if Ctot_pad > 4 * Ctot:
        Ctot_pad = Ctot
    Wout = W * Ctot_pad

    # --- BN (training-mode) batch stats folded into per-channel scale/shift ---
    # Computed on the NHWC view so the reduce fuses with the layout transpose.
    x_nhwc = jnp.transpose(x_nchw, (0, 2, 3, 1))          # (N, H, W, C)
    x_flat = x_nhwc.reshape(N, H, WC)
    mean = jnp.mean(x_nhwc, axis=(0, 1, 2))
    var = jnp.mean(jnp.square(x_nhwc), axis=(0, 1, 2)) - jnp.square(mean)
    scale = gamma / jnp.sqrt(var + EPS)
    shift = beta - mean * scale
    scale_wc = jnp.tile(scale, W).reshape(1, WC)
    shift_wc = jnp.tile(shift, W).reshape(1, WC)

    # --- fused conv-Toeplitz + passthrough weight: one gather, cached indices ---
    idx = _fused_weight_indices(C, Cout, W, Ctot_pad)     # numpy constant
    w_ext = jnp.concatenate([w_oihw.astype(jnp.float32).reshape(-1),
                             jnp.zeros((1,), jnp.float32),
                             jnp.ones((1,), jnp.float32)])
    big_w = w_ext[idx]                                    # (4*WC, Wout)

    # Images per grid step: whole batch on single-TC chips; keep >= num_cores
    # grid steps on multi-TC devices so "parallel" fills every core.
    if block_batch is None:
        ncores = _tensorcores_per_device()
        budget = 8 << 20                                   # comfortable VMEM bound
        per_img = 4 * H * (WC * 6 + Wout * 3)              # operands + temporaries + 2x-buffered io
        B = 1
        for cand in range(1, N + 1):
            if N % cand == 0 and N // cand >= min(ncores, N) and cand * per_img <= budget:
                B = cand
    else:
        B = block_batch
    assert N % B == 0

    kernel = functools.partial(_single_layer_kernel, B=B, H=H, WC=WC)

    out_flat = pl.pallas_call(
        kernel,
        out_shape=jax.ShapeDtypeStruct((N, H, Wout), jnp.float32),
        grid_spec=pltpu.PrefetchScalarGridSpec(
            num_scalar_prefetch=0,
            grid=(N // B,),
            in_specs=[
                pl.BlockSpec((B, H, WC), lambda n: (n, 0, 0)),
                pl.BlockSpec((1, WC), lambda n: (0, 0)),
                pl.BlockSpec((1, WC), lambda n: (0, 0)),
                pl.BlockSpec((4 * WC, Wout), lambda n: (0, 0)),
            ],
            out_specs=pl.BlockSpec((B, H, Wout), lambda n: (n, 0, 0)),
        ),
        compiler_params=pltpu.CompilerParams(
            dimension_semantics=("parallel",)),
    )(x_flat, scale_wc, shift_wc, big_w)

    # (N, H, W*Ctot_pad) -> NCHW, dropping the lane-padding channels.
    out = out_flat.reshape(N, H, W, Ctot_pad)[..., :Ctot]
    return jnp.transpose(out, (0, 3, 1, 2))


def _reference(x_nchw, gamma, beta, w_oihw):
    """Pure-JAX reference mirroring the PyTorch forward (training-mode BN)."""
    mean = jnp.mean(x_nchw, axis=(0, 2, 3))
    var = jnp.mean((x_nchw - mean[None, :, None, None]) ** 2, axis=(0, 2, 3))
    xn = (x_nchw - mean[None, :, None, None]) / jnp.sqrt(
        var[None, :, None, None] + EPS)
    xn = xn * gamma[None, :, None, None] + beta[None, :, None, None]
    a = jnp.maximum(xn, 0.0)
    out = lax.conv_general_dilated(
        a, w_oihw, window_strides=(1, 1), padding=((1, 1), (1, 1)),
        dimension_numbers=("NCHW", "OIHW", "NCHW"))
    return jnp.concatenate([x_nchw, out], axis=1)


if __name__ == "__main__":
    N, C, H, W = 2, 4, 16, 16        # nChannels = 4
    growth = 8                       # growthRate = 8

    key = jax.random.PRNGKey(0)
    kx, kg, kb, kw = jax.random.split(key, 4)

    x = jax.random.normal(kx, (N, C, H, W), dtype=jnp.float32)
    gamma = 1.0 + 0.1 * jax.random.normal(kg, (C,), dtype=jnp.float32)
    beta = 0.1 * jax.random.normal(kb, (C,), dtype=jnp.float32)
    w = 0.1 * jax.random.normal(kw, (growth, C, 3, 3), dtype=jnp.float32)

    out = jax.jit(single_layer_forward)(x, gamma, beta, w)
    out = jax.block_until_ready(out)

    ref = _reference(x, gamma, beta, w)
    assert out.shape == (N, C + growth, H, W), out.shape
    np.testing.assert_allclose(np.asarray(out), np.asarray(ref),
                               rtol=5e-4, atol=5e-4)

    print("KERNEL_OK")
</pallas_src>

<mosaic_0001>
module attributes {stable_mosaic.version = 11 : i64} {
  func.func @_single_layer_kernel(%arg0: i32, %arg1: memref<2x16x64xf32, #tpu.memory_space<vmem>>, %arg2: memref<1x64xf32, #tpu.memory_space<vmem>>, %arg3: memref<1x64xf32, #tpu.memory_space<vmem>>, %arg4: memref<256x256xf32, #tpu.memory_space<vmem>>, %arg5: memref<2x16x256xf32, #tpu.memory_space<vmem>>) attributes {dimension_semantics = [#tpu.dimension_semantics<parallel>], iteration_bounds = array<i64: 1>, scalar_prefetch = 0 : i64, scratch_operands = 0 : i64, tpu.core_type = #tpu.core_type<tc>, window_params = [{transform_indices = @transform_0, window_bounds = array<i64: 2, 16, 64>}, {pipeline_mode = #tpu.pipeline_mode<synchronous>, transform_indices = @transform_1, window_bounds = array<i64: 1, 64>}, {pipeline_mode = #tpu.pipeline_mode<synchronous>, transform_indices = @transform_2, window_bounds = array<i64: 1, 64>}, {pipeline_mode = #tpu.pipeline_mode<synchronous>, transform_indices = @transform_3, window_bounds = array<i64: 256, 256>}, {transform_indices = @transform_4, window_bounds = array<i64: 2, 16, 256>}]} {
    %c0 = arith.constant 0 : index
    %c0_0 = arith.constant 0 : index
    %c0_1 = arith.constant 0 : index
    %0 = vector.load %arg1[%c0, %c0_0, %c0_1] : memref<2x16x64xf32, #tpu.memory_space<vmem>>, vector<2x16x64xf32>
    %c0_2 = arith.constant 0 : index
    %c0_3 = arith.constant 0 : index
    %1 = vector.load %arg2[%c0_2, %c0_3] : memref<1x64xf32, #tpu.memory_space<vmem>>, vector<1x64xf32>
    %2 = vector.shape_cast %1 : vector<1x64xf32> to vector<64xf32>
    %3 = vector.shape_cast %2 : vector<64xf32> to vector<1x1x64xf32>
    %4 = vector.broadcast %3 : vector<1x1x64xf32> to vector<2x16x64xf32>
    %5 = arith.mulf %0, %4 : vector<2x16x64xf32>
    %c0_4 = arith.constant 0 : index
    %c0_5 = arith.constant 0 : index
    %6 = vector.load %arg3[%c0_4, %c0_5] : memref<1x64xf32, #tpu.memory_space<vmem>>, vector<1x64xf32>
    %7 = vector.shape_cast %6 : vector<1x64xf32> to vector<64xf32>
    %8 = vector.shape_cast %7 : vector<64xf32> to vector<1x1x64xf32>
    %9 = vector.broadcast %8 : vector<1x1x64xf32> to vector<2x16x64xf32>
    %10 = arith.addf %5, %9 : vector<2x16x64xf32>
    %cst = arith.constant 0.000000e+00 : f32
    %11 = vector.broadcast %cst : f32 to vector<2x16x64xf32>
    %12 = arith.maximumf %10, %11 : vector<2x16x64xf32>
    %cst_6 = arith.constant 0.000000e+00 : f32
    %13 = vector.broadcast %cst_6 : f32 to vector<2x1x64xf32>
    %14 = vector.extract_strided_slice %12 {offsets = [0, 0, 0], sizes = [2, 15, 64], strides = [1, 1, 1]} : vector<2x16x64xf32> to vector<2x15x64xf32>
    %15 = tpu.concatenate %13, %14 in 1 : vector<2x1x64xf32>, vector<2x15x64xf32> -> vector<2x16x64xf32>
    %16 = vector.extract_strided_slice %12 {offsets = [0, 1, 0], sizes = [2, 15, 64], strides = [1, 1, 1]} : vector<2x16x64xf32> to vector<2x15x64xf32>
    %17 = tpu.concatenate %16, %13 in 1 : vector<2x15x64xf32>, vector<2x1x64xf32> -> vector<2x16x64xf32>
    %18 = tpu.concatenate %15, %12, %17, %0 in 2 : vector<2x16x64xf32>, vector<2x16x64xf32>, vector<2x16x64xf32>, vector<2x16x64xf32> -> vector<2x16x256xf32>
    %19 = vector.shape_cast %18 : vector<2x16x256xf32> to vector<32x256xf32>
    %c0_7 = arith.constant 0 : index
    %c0_8 = arith.constant 0 : index
    %20 = vector.load %arg4[%c0_7, %c0_8] : memref<256x256xf32, #tpu.memory_space<vmem>>, vector<256x256xf32>
    %cst_9 = arith.constant dense<0.000000e+00> : vector<32x256xf32>
    %21 = tpu.matmul %19, %20, %cst_9 {dimension_numbers = #tpu.dot_dimension_numbers<[1], [0], [0], [1], [0, 0, 1, 1], [], []>} : vector<32x256xf32>, vector<256x256xf32>, vector<32x256xf32> -> vector<32x256xf32>
    %22 = vector.shape_cast %21 : vector<32x256xf32> to vector<2x16x256xf32>
    %c0_10 = arith.constant 0 : index
    %c0_11 = arith.constant 0 : index
    %c0_12 = arith.constant 0 : index
    %23 = vector.load %arg5[%c0_10, %c0_11, %c0_12] : memref<2x16x256xf32, #tpu.memory_space<vmem>>, vector<2x16x256xf32>
    tpu.vector_store %arg5[%c0_10, %c0_11, %c0_12], %22 {strides = array<i32>} : memref<2x16x256xf32, #tpu.memory_space<vmem>>, vector<2x16x256xf32>,
    return
  }
  func.func @transform_0(%arg0: i32) -> (i32, i32, i32) {
    %c0_i32 = arith.constant 0 : i32
    %c0_i32_0 = arith.constant 0 : i32
    %c0_i32_1 = arith.constant 0 : i32
    return %arg0, %c0_i32, %c0_i32_0 : i32, i32, i32
  }
  func.func @transform_1(%arg0: i32) -> (i32, i32) {
    %c0_i32 = arith.constant 0 : i32
    %c0_i32_0 = arith.constant 0 : i32
    %c0_i32_1 = arith.constant 0 : i32
    return %c0_i32, %c0_i32_0 : i32, i32
  }
  func.func @transform_2(%arg0: i32) -> (i32, i32) {
    %c0_i32 = arith.constant 0 : i32
    %c0_i32_0 = arith.constant 0 : i32
    %c0_i32_1 = arith.constant 0 : i32
    return %c0_i32, %c0_i32_0 : i32, i32
  }
  func.func @transform_3(%arg0: i32) -> (i32, i32) {
    %c0_i32 = arith.constant 0 : i32
    %c0_i32_0 = arith.constant 0 : i32
    %c0_i32_1 = arith.constant 0 : i32
    return %c0_i32, %c0_i32_0 : i32, i32
  }
  func.func @transform_4(%arg0: i32) -> (i32, i32, i32) {
    %c0_i32 = arith.constant 0 : i32
    %c0_i32_0 = arith.constant 0 : i32
    %c0_i32_1 = arith.constant 0 : i32
    return %arg0, %c0_i32, %c0_i32_0 : i32, i32, i32
  }
}

</mosaic_0001>

<bundles_post_ra>
// kernel: tile.13
= control target key start
LH: loop header
LB: loop body
LE: loop exit
PB: predicated region body
PF: predicated region fallthrough
CT: control target
= control target key end

     0   :  { %s28_s0 = inlined_call_operand.vmem [shape: f32[4], index: 0, kind: input, shape index: {}]   ;;  %s29_s1 = inlined_call_operand.vmem [shape: f32[16,4], index: 1, kind: output, shape index: {}]  }
   0x1   :  { %v4_v0 = vld [vmem:[%s28_s0] ss:$0 sm:$0xff] }
   0x2   :  { %5 = vst [vmem:[%s29_s1] sm:$0xff] %v4_v0 }
   0x3   :  { %8 = vst [vmem:[%s29_s1 + $0x8] sm:$0xff] %v4_v0 }

// kernel: tile.14
= control target key start
LH: loop header
LB: loop body
LE: loop exit
PB: predicated region body
PF: predicated region fallthrough
CT: control target
= control target key end

     0   :  { %s131_s10 = smov 60   ;;  %s132_s11 = smov 52   ;;  %vm3_vm0 = vcmask 31744   ;;  %vm9_vm1 = vcmask 523744   ;;  %vm15_vm2 = vcmask 490944   ;;  %vm21_vm3 = vcmask 458144   ;;  %s207_s0 = inlined_call_operand.vmem [shape: f32[16,4], index: 0, kind: input, shape index: {}]   ;;  %s208_s1 = inlined_call_operand.vmem [shape: f32[1,64], index: 1, kind: output, shape index: {}]  }
   0x1   :  { %v101_v0 = vld [vmem:[%s207_s0 + $0xf] sm:$0x1]   ;;  %v103_v1 = vld [vmem:[%s207_s0 + $0xd] sm:$0x1]   ;;  %v105_v2 = vld [vmem:[%s207_s0 + $0xb] sm:$0x1]  }
   0x2   :  { %7 = vrot.lane.b32.xlu0 %v101_v0, %s131_s10  ;;  %19 = vrot.lane.b32.xlu1 %v103_v1, %s132_s11  ;;  %s133_s14 = smov 44   ;;  %v102_v3 = vld [vmem:[%s207_s0 + $0xe] sm:$0x1]   ;;  %v104_v4 = vld [vmem:[%s207_s0 + $0xc] sm:$0x1]   ;;  %s134_s19 = smov 56  }
   0x3   :  { %31 = vrot.lane.b32.xlu2 %v105_v2, %s133_s14  ;;  %s135_s20 = smov 48   ;;  %v106_v5 = vld [vmem:[%s207_s0 + $0xa] sm:$0x1]   ;;  %s136_s23 = smov 40   ;;  %v107_v6 = vld [vmem:[%s207_s0 + $0x9] sm:$0x1]  }
   0x4   :  { %v108_v7 = vld [vmem:[%s207_s0 + $0x8] sm:$0x1]   ;;  %s137_s28 = smov 36   ;;  %s138_s29 = smov 32   ;;  %v109_v8 = vld [vmem:[%s207_s0 + $0x7] sm:$0x1]  }
   0x5   :  { %s139_s3 = smov 28   ;;  %v110_v9 = vld [vmem:[%s207_s0 + $0x6] sm:$0x1]   ;;  %v111_v10 = vld [vmem:[%s207_s0 + $0x5] sm:$0x1]   ;;  %s140_s8 = smov 24  }
   0x6   :  { %s141_s9 = smov 20   ;;  %v112_v11 = vld [vmem:[%s207_s0 + $0x4] sm:$0x1]   ;;  %s142_s12 = smov 16   ;;  %v113_v12 = vld [vmem:[%s207_s0 + $0x3] sm:$0x1]  }
   0x7   :  { %v114_v13 = vld [vmem:[%s207_s0 + $0x2] sm:$0x1]   ;;  %s143_s17 = smov 12   ;;  %s144_s18 = smov 8   ;;  %v115_v14 = vld [vmem:[%s207_s0 + $0x1] sm:$0x1]  }
   0x8   :  { %s145_s21 = smov 4   ;;  %v2_v15 = vld [vmem:[%s207_s0] sm:$0x1]   ;;  %vm27_vm4 = vcmask 425344   ;;  %vm33_vm5 = vcmask 392544   ;;  %vm39_vm6 = vcmask 359744  }
   0x9   :  { %4 = vst.msk [vmem:[#allocation0] sm:$0x1] %vm3_vm0, %v2_v15   ;;  %vm45_vm7 = vcmask 326944   ;;  %vm51_vm8 = vcmask 294144   ;;  %vm57_vm9 = vcmask 261344   ;;  %vm63_vm10 = vcmask 228544  }
   0xa   :  { %13 = vrot.lane.b32.xlu0 %v102_v3, %s134_s19  ;;  %25 = vrot.lane.b32.xlu1 %v104_v4, %s135_s20  ;;  %vm69_vm11 = vcmask 195744   ;;  %vm75_vm12 = vcmask 162944   ;;  %vm81_vm13 = vcmask 130144   ;;  %vm87_vm14 = vcmask 97344  }
   0xb   :  { %37 = vrot.lane.b32.xlu2 %v106_v5, %s136_s23  ;;  %vm93_vm15 = vcmask 64544  }
  0x12   :  { %43 = vrot.lane.b32.xlu0 %v107_v6, %s137_s28  ;;  %49 = vrot.lane.b32.xlu1 %v108_v7, %s138_s29 }
  0x13   :  { %55 = vrot.lane.b32.xlu2 %v109_v8, %s139_s3 }
  0x1a   :  { %61 = vrot.lane.b32.xlu0 %v110_v9, %s140_s8  ;;  %67 = vrot.lane.b32.xlu1 %v111_v10, %s141_s9 }
  0x1b   :  { %73 = vrot.lane.b32.xlu2 %v112_v11, %s142_s12 }
  0x22   :  { %79 = vrot.lane.b32.xlu0 %v113_v12, %s143_s17  ;;  %85 = vrot.lane.b32.xlu1 %v114_v13, %s144_s18 }
  0x23   :  { %91 = vrot.lane.b32.xlu2 %v115_v14, %s145_s21 }
  0x5d   :  { %v32_v16 = vpop.permute.xlu2 %31  }
  0x65   :  { %v38_v17 = vpop.permute.xlu2 %37  }
  0x6d   :  { %v56_v18 = vpop.permute.xlu2 %55  }
  0x74   :  { %v8_v19 = vpop.permute.xlu0 %7   ;;  %v20_v20 = vpop.permute.xlu1 %19  }
  0x75   :  { %10 = vst.msk [vmem:[#allocation0] sm:$0x1] %vm9_vm1, %v8_v19   ;;  %v74_v21 = vpop.permute.xlu2 %73  }
  0x7c   :  { %v14_v22 = vpop.permute.xlu0 %13   ;;  %v26_v23 = vpop.permute.xlu1 %25  }
  0x7d   :  { %16 = vst.msk [vmem:[#allocation0] sm:$0x1] %vm15_vm2, %v14_v22   ;;  %v92_v24 = vpop.permute.xlu2 %91  }
  0x7e   :  { %22 = vst.msk [vmem:[#allocation0] sm:$0x1] %vm21_vm3, %v20_v20  }
  0x7f   :  { %28 = vst.msk [vmem:[#allocation0] sm:$0x1] %vm27_vm4, %v26_v23  }
  0x80   :  { %34 = vst.msk [vmem:[#allocation0] sm:$0x1] %vm33_vm5, %v32_v16  }
  0x81   :  { %40 = vst.msk [vmem:[#allocation0] sm:$0x1] %vm39_vm6, %v38_v17  }
  0x84   :  { %v44_v25 = vpop.permute.xlu0 %43   ;;  %v50_v26 = vpop.permute.xlu1 %49  }
  0x85   :  { %46 = vst.msk [vmem:[#allocation0] sm:$0x1] %vm45_vm7, %v44_v25  }
  0x86   :  { %52 = vst.msk [vmem:[#allocation0] sm:$0x1] %vm51_vm8, %v50_v26  }
  0x87   :  { %58 = vst.msk [vmem:[#allocation0] sm:$0x1] %vm57_vm9, %v56_v18  }
  0x8c   :  { %v62_v27 = vpop.permute.xlu0 %61   ;;  %v68_v28 = vpop.permute.xlu1 %67  }
  0x8d   :  { %64 = vst.msk [vmem:[#allocation0] sm:$0x1] %vm63_vm10, %v62_v27  }
  0x8e   :  { %70 = vst.msk [vmem:[#allocation0] sm:$0x1] %vm69_vm11, %v68_v28  }
  0x8f   :  { %76 = vst.msk [vmem:[#allocation0] sm:$0x1] %vm75_vm12, %v74_v21  }
  0x94   :  { %v80_v29 = vpop.permute.xlu0 %79   ;;  %v86_v30 = vpop.permute.xlu1 %85  }
  0x95   :  { %82 = vst.msk [vmem:[#allocation0] sm:$0x1] %vm81_vm13, %v80_v29  }
  0x96   :  { %88 = vst.msk [vmem:[#allocation0] sm:$0x1] %vm87_vm14, %v86_v30  }
  0x97   :  { %94 = vst.msk [vmem:[#allocation0] sm:$0x1] %vm93_vm15, %v92_v24  }
  0x9e   :  { %v97_v31 = vld [vmem:[#allocation0] sm:$0x1] }
  0x9f   :  { %100 = vst [vmem:[%s208_s1] sm:$0x1] %v97_v31 }

// kernel: single_layer_forward.1
= control target key start
LH: loop header
LB: loop body
LE: loop exit
PB: predicated region body
PF: predicated region fallthrough
CT: control target
= control target key end

     0   :  { %s323_s30 = smov 64   ;;  %vm45_vm0 = vcmask 1040384   ;;  %vm58_vm1 = vcmask 1046528   ;;  %vm99_vm2 = vcmask 523264   ;;  %s631_s0 = inlined_call_operand.vmem [shape: f32[2,16,64], index: 0, kind: input, shape index: {}]   ;;  %s632_s1 = inlined_call_operand.vmem [shape: f32[1,64], index: 1, kind: input, shape index: {}]   ;;  %s633_s2 = inlined_call_operand.vmem [shape: f32[1,64], index: 2, kind: input, shape index: {}]   ;;  %s634_s3 = inlined_call_operand.vmem [shape: f32[256,256], index: 3, kind: input, shape index: {}]   ;;  %s635_s4 = inlined_call_operand.vmem [shape: f32[2,16,256], index: 4, kind: output, shape index: {}]  }
   0x1   :  { %v17_v0 = vld [vmem:[%s631_s0] sm:$0xff]  ;;  %v361_v3 = vld [vmem:[%s631_s0 + $0x8] sm:$0xff]  ;;  %v19_v6 = vld [vmem:[%s631_s0 + $0x10] sm:$0xff] }
   0x2   :  { %v321_v1 = vld [vmem:[%s632_s1] ss:$0 sm:$0xff]  ;;  %v370_v7 = vld [vmem:[%s631_s0 + $0x18] sm:$0xff]  ;;  %v138_v8 = vld [vmem:[%s634_s3 + $0xf0] sm:$0xff] }
   0x3   :  { %v322_v2 = vld [vmem:[%s633_s2] ss:$0 sm:$0xff]  ;;  %v25_v4 = vmul.f32 %v321_v1, %v17_v0  ;;  %v26_v5 = vmul.f32 %v321_v1, %v361_v3  ;;  %v27_v9 = vmul.f32 %v321_v1, %v19_v6  ;;  %v28_v10 = vmul.f32 %v321_v1, %v370_v7  ;;  %172 = vmatpush.msra.mxu0 %v138_v8  ;;  %v170_v11 = vld [vmem:[%s634_s3 + $0x1f0] sm:$0xff]  ;;  %v139_v12 = vld [vmem:[%s634_s3 + $0xf8] sm:$0xff] }
   0x4   :  { %v171_v13 = vld [vmem:[%s634_s3 + $0x1f8] sm:$0xff]  ;;  %201 = vmatpush.msra.mxu1 %v170_v11  ;;  %230 = vmatpush.msra.mxu2 %v139_v12  ;;  %v136_v15 = vld [vmem:[%s634_s3 + $0xe0] sm:$0xff]  ;;  %v137_v17 = vld [vmem:[%s634_s3 + $0xe8] sm:$0xff] }
   0x5   :  { %v33_v14 = vadd.f32 %v322_v2, %v25_v4  ;;  %v168_v16 = vld [vmem:[%s634_s3 + $0x1e0] sm:$0xff]  ;;  %v35_v18 = vadd.f32 %v322_v2, %v27_v9  ;;  %259 = vmatpush.msra.mxu3 %v171_v13  ;;  %173 = vmatpush.msra.mxu0 %v136_v15  ;;  %v169_v19 = vld [vmem:[%s634_s3 + $0x1e8] sm:$0xff]  ;;  %v134_v20 = vld [vmem:[%s634_s3 + $0xd0] sm:$0xff]  ;;  %v34_v23 = vadd.f32 %v322_v2, %v26_v5 }
   0x6   :  { %v166_v21 = vld [vmem:[%s634_s3 + $0x1d0] sm:$0xff]  ;;  %202 = vmatpush.msra.mxu1 %v168_v16  ;;  %231 = vmatpush.msra.mxu2 %v137_v17  ;;  %v135_v24 = vld [vmem:[%s634_s3 + $0xd8] sm:$0xff]  ;;  %v132_v26 = vld [vmem:[%s634_s3 + $0xc0] sm:$0xff]  ;;  %v36_v28 = vadd.f32 %v322_v2, %v28_v10 }
   0x7   :  { %v403_v22 = vmax.f32 %v33_v14, 0.0  ;;  %v167_v25 = vld [vmem:[%s634_s3 + $0x1d8] sm:$0xff]  ;;  %v414_v27 = vmax.f32 %v35_v18, 0.0  ;;  %260 = vmatpush.msra.mxu3 %v169_v19  ;;  %174 = vmatpush.msra.mxu0 %v134_v20  ;;  %v164_v29 = vld [vmem:[%s634_s3 + $0x1c0] sm:$0xff]  ;;  %v133_v31 = vld [vmem:[%s634_s3 + $0xc8] sm:$0xff]  ;;  %v431_v35 = vmax.f32 %v34_v23, 0.0 }
   0x8   :  { %203 = vmatpush.msra.mxu1 %v166_v21  ;;  %232 = vmatpush.msra.mxu2 %v135_v24  ;;  %v165_v33 = vld [vmem:[%s634_s3 + $0x1c8] sm:$0xff]  ;;  %v130_v34 = vld [vmem:[%s634_s3 + $0xb0] sm:$0xff]  ;;  %v131_v37 = vld [vmem:[%s634_s3 + $0xb8] sm:$0xff]  ;;  %v440_v38 = vmax.f32 %v36_v28, 0.0 }
   0x9   :  { %v301_v30 = vpack.i.bf16 %v17_v0, %v403_v22  ;;  %v311_v32 = vpack.i.bf16 %v19_v6, %v414_v27  ;;  %261 = vmatpush.msra.mxu3 %v167_v25  ;;  %175 = vmatpush.msra.mxu0 %v132_v26  ;;  %v162_v36 = vld [vmem:[%s634_s3 + $0x1b0] sm:$0xff]  ;;  %v163_v39 = vld [vmem:[%s634_s3 + $0x1b8] sm:$0xff]  ;;  %v128_v40 = vld [vmem:[%s634_s3 + $0xa0] sm:$0xff]  ;;  %v306_v45 = vpack.i.bf16 %v361_v3, %v431_v35  ;;  %v46_v23 = vrot.slane %v403_v22, 7 }
   0xa   :  { %204 = vmatpush.msra.mxu1 %v164_v29  ;;  %233 = vmatpush.msra.mxu2 %v133_v31  ;;  %v160_v41 = vld [vmem:[%s634_s3 + $0x1a0] sm:$0xff]  ;;  %v129_v42 = vld [vmem:[%s634_s3 + $0xa8] sm:$0xff]  ;;  %v126_v44 = vld [vmem:[%s634_s3 + $0x90] sm:$0xff]  ;;  %v316_v48 = vpack.i.bf16 %v370_v7, %v440_v38  ;;  %v59_v24 = vrot.slane %v403_v22, 1  ;;  %v60_v25 = vrot.slane %v431_v35, 1  ;;  %v47_v22 = vrot.slane %v431_v35, 7 }
   0xb   :  { %302 = vrot.lane.b32.xlu0 %v301_v30, %s323_s30  ;;  %312 = vrot.lane.b32.xlu1 %v311_v32, %s323_s30  ;;  %v161_v43 = vld [vmem:[%s634_s3 + $0x1a8] sm:$0xff]  ;;  %v158_v46 = vld [vmem:[%s634_s3 + $0x190] sm:$0xff]  ;;  %v56_v28 = vsel %vm45_vm0, 0.0, %v46_v23 }
   0xc   :  { %262 = vmatpush.msra.mxu3 %v165_v33  ;;  %176 = vmatpush.msra.mxu0 %v130_v34  ;;  %v127_v47 = vld [vmem:[%s634_s3 + $0x98] sm:$0xff]  ;;  %v124_v50 = vld [vmem:[%s634_s3 + $0x80] sm:$0xff]  ;;  %v125_v52 = vld [vmem:[%s634_s3 + $0x88] sm:$0xff]  ;;  %v61_v29 = vsel %vm58_vm1, %v59_v24, %v60_v25 }
   0xd   :  { %205 = vmatpush.msra.mxu1 %v162_v36  ;;  %234 = vmatpush.msra.mxu2 %v131_v37  ;;  %v159_v49 = vld [vmem:[%s634_s3 + $0x198] sm:$0xff]  ;;  %v156_v51 = vld [vmem:[%s634_s3 + $0x180] sm:$0xff]  ;;  %v157_v53 = vld [vmem:[%s634_s3 + $0x188] sm:$0xff]  ;;  %v48_v36 = vsel %vm45_vm0, %v46_v23, %v47_v22  ;;  %v69_v37 = vsel %vm58_vm1, %v60_v25, 0.0 }
   0xe   :  { %263 = vmatpush.msra.mxu3 %v163_v39  ;;  %177 = vmatpush.msra.mxu0 %v128_v40  ;;  %v122_v54 = vld [vmem:[%s634_s3 + $0x70] sm:$0xff]  ;;  %v123_v56 = vld [vmem:[%s634_s3 + $0x78] sm:$0xff]  ;;  %v120_v58 = vld [vmem:[%s634_s3 + $0x60] sm:$0xff] }
   0xf   :  { %206 = vmatpush.msra.mxu1 %v160_v41  ;;  %235 = vmatpush.msra.mxu2 %v129_v42  ;;  %v154_v55 = vld [vmem:[%s634_s3 + $0x170] sm:$0xff]  ;;  %v155_v57 = vld [vmem:[%s634_s3 + $0x178] sm:$0xff]  ;;  %v152_v59 = vld [vmem:[%s634_s3 + $0x160] sm:$0xff]  ;;  %v49_v42 = vrot.slane %v414_v27, 7 }
  0x10   :  { %264 = vmatpush.msra.mxu3 %v161_v43  ;;  %178 = vmatpush.msra.mxu0 %v126_v44  ;;  %v121_v60 = vld [vmem:[%s634_s3 + $0x68] sm:$0xff]  ;;  %v118_v62 = vld [vmem:[%s634_s3 + $0x50] sm:$0xff]  ;;  %v119_v0 = vld [vmem:[%s634_s3 + $0x58] sm:$0xff]  ;;  %v62_v43 = vrot.slane %v414_v27, 1  ;;  %v63_v44 = vrot.slane %v440_v38, 1 }
  0x11   :  { %207 = vmatpush.msra.mxu1 %v158_v46  ;;  %236 = vmatpush.msra.mxu2 %v127_v47  ;;  %v153_v61 = vld [vmem:[%s634_s3 + $0x168] sm:$0xff]  ;;  %v150_v63 = vld [vmem:[%s634_s3 + $0x150] sm:$0xff]  ;;  %v151_v1 = vld [vmem:[%s634_s3 + $0x158] sm:$0xff] }
  0x12   :  { %265 = vmatpush.msra.mxu3 %v159_v49  ;;  %179 = vmatpush.msra.mxu0 %v124_v50  ;;  %v116_v2 = vld [vmem:[%s634_s3 + $0x40] sm:$0xff]  ;;  %v117_v4 = vld [vmem:[%s634_s3 + $0x48] sm:$0xff]  ;;  %v114_v6 = vld [vmem:[%s634_s3 + $0x30] sm:$0xff]  ;;  %v64_v49 = vsel %vm58_vm1, %v62_v43, %v63_v44 }
  0x13   :  { %307 = vrot.lane.b32.xlu0 %v306_v45, %s323_s30  ;;  %317 = vrot.lane.b32.xlu1 %v316_v48, %s323_s30  ;;  %v148_v3 = vld [vmem:[%s634_s3 + $0x140] sm:$0xff]  ;;  %v149_v5 = vld [vmem:[%s634_s3 + $0x148] sm:$0xff]  ;;  %v57_v48 = vsel %vm45_vm0, 0.0, %v49_v42 }
  0x14   :  { %208 = vmatpush.msra.mxu1 %v156_v51  ;;  %237 = vmatpush.msra.mxu2 %v125_v52  ;;  %v146_v7 = vld [vmem:[%s634_s3 + $0x130] sm:$0xff]  ;;  %v115_v8 = vld [vmem:[%s634_s3 + $0x38] sm:$0xff]  ;;  %v112_v10 = vld [vmem:[%s634_s3 + $0x20] sm:$0xff]  ;;  %v50_v52 = vrot.slane %v440_v38, 7 }
  0x15   :  { %266 = vmatpush.msra.mxu3 %v157_v53  ;;  %180 = vmatpush.msra.mxu0 %v122_v54  ;;  %v147_v9 = vld [vmem:[%s634_s3 + $0x138] sm:$0xff]  ;;  %v144_v11 = vld [vmem:[%s634_s3 + $0x120] sm:$0xff]  ;;  %v113_v12 = vld [vmem:[%s634_s3 + $0x28] sm:$0xff] }
  0x16   :  { %209 = vmatpush.msra.mxu1 %v154_v55  ;;  %238 = vmatpush.msra.mxu2 %v123_v56  ;;  %v145_v13 = vld [vmem:[%s634_s3 + $0x128] sm:$0xff]  ;;  %v110_v14 = vld [vmem:[%s634_s3 + $0x10] sm:$0xff]  ;;  %v111_v16 = vld [vmem:[%s634_s3 + $0x18] sm:$0xff]  ;;  %v51_v55 = vsel %vm45_vm0, %v49_v42, %v50_v52  ;;  %v70_v56 = vsel %vm58_vm1, %v63_v44, 0.0 }
  0x17   :  { %267 = vmatpush.msra.mxu3 %v155_v57  ;;  %181 = vmatpush.msra.mxu0 %v120_v58  ;;  %v142_v15 = vld [vmem:[%s634_s3 + $0x110] sm:$0xff]  ;;  %v143_v17 = vld [vmem:[%s634_s3 + $0x118] sm:$0xff]  ;;  %v108_v18 = vld [vmem:[%s634_s3] sm:$0xff] }
  0x18   :  { %210 = vmatpush.msra.mxu1 %v152_v59  ;;  %239 = vmatpush.msra.mxu2 %v121_v60  ;;  %v140_v19 = vld [vmem:[%s634_s3 + $0x100] sm:$0xff]  ;;  %v109_v20 = vld [vmem:[%s634_s3 + $0x8] sm:$0xff] }
  0x19   :  { %268 = vmatpush.msra.mxu3 %v153_v61  ;;  %182 = vmatpush.msra.mxu0 %v118_v62  ;;  %v141_v21 = vld [vmem:[%s634_s3 + $0x108] sm:$0xff] }
  0x1a   :  { %211 = vmatpush.msra.mxu1 %v150_v63  ;;  %240 = vmatpush.msra.mxu2 %v119_v0 }
  0x1b   :  { %269 = vmatpush.msra.mxu3 %v151_v1  ;;  %183 = vmatpush.msra.mxu0 %v116_v2 }
  0x1c   :  { %212 = vmatpush.msra.mxu1 %v148_v3  ;;  %241 = vmatpush.msra.mxu2 %v117_v4 }
  0x1d   :  { %270 = vmatpush.msra.mxu3 %v149_v5  ;;  %184 = vmatpush.msra.mxu0 %v114_v6 }
  0x1e   :  { %213 = vmatpush.msra.mxu1 %v146_v7  ;;  %242 = vmatpush.msra.mxu2 %v115_v8 }
  0x1f   :  { %271 = vmatpush.msra.mxu3 %v147_v9  ;;  %185 = vmatpush.msra.mxu0 %v112_v10 }
  0x20   :  { %214 = vmatpush.msra.mxu1 %v144_v11  ;;  %243 = vmatpush.msra.mxu2 %v113_v12 }
  0x21   :  { %272 = vmatpush.msra.mxu3 %v145_v13  ;;  %186 = vmatpush.msra.mxu0 %v110_v14 }
  0x22   :  { %215 = vmatpush.msra.mxu1 %v142_v15  ;;  %244 = vmatpush.msra.mxu2 %v111_v16 }
  0x23   :  { %273 = vmatpush.msra.mxu3 %v143_v17  ;;  %187 = vmatpush.msra.mxu0 %v108_v18 }
  0x24   :  { %216 = vmatpush.msra.mxu1 %v140_v19  ;;  %245 = vmatpush.msra.mxu2 %v109_v20 }
  0x25   :  { %274 = vmatpush.msra.mxu3 %v141_v21 }
  0x7d   :  { %v303_v26 = vpop.permute.xlu0 %302  ;;  %v313_v39 = vpop.permute.xlu1 %312 }
  0x7e   :  { %v305_v30 = vunpack.i.h.bf16 %v303_v26  ;;  %v304_v31 = vunpack.i.l.bf16 %v303_v26  ;;  %v315_v46 = vunpack.i.h.bf16 %v313_v39  ;;  %v314_v47 = vunpack.i.l.bf16 %v313_v39 }
  0x80   :  { %v100_v32 = vsel %vm99_vm2, %v56_v28, %v304_v31  ;;  %v104_v33 = vsel %vm99_vm2, %v61_v29, %v305_v30  ;;  %v102_v50 = vsel %vm99_vm2, %v57_v48, %v314_v47  ;;  %v106_v27 = vsel %vm99_vm2, %v64_v49, %v315_v46 }
  0x81   :  { %188 = vmatmul.f32.vlgmr.msra.gmra.mxu0 %v100_v32  ;;  %217 = vmatmul.f32.vlgmr.msra.gmra.mxu1 %v104_v33 }
  0x82   :  { %246 = vmatmul.f32.vlgmr.msra.gmra.mxu2 %v100_v32  ;;  %275 = vmatmul.f32.vlgmr.msra.gmra.mxu3 %v104_v33 }
  0x85   :  { %v308_v34 = vpop.permute.xlu0 %307  ;;  %v318_v51 = vpop.permute.xlu1 %317 }
  0x86   :  { %v310_v40 = vunpack.i.h.bf16 %v308_v34  ;;  %v309_v41 = vunpack.i.l.bf16 %v308_v34  ;;  %v320_v53 = vunpack.i.h.bf16 %v318_v51  ;;  %v319_v54 = vunpack.i.l.bf16 %v318_v51 }
  0x88   :  { %v101_v45 = vsel %vm99_vm2, %v48_v36, %v309_v41  ;;  %v105_v35 = vsel %vm99_vm2, %v69_v37, %v310_v40  ;;  %v103_v57 = vsel %vm99_vm2, %v51_v55, %v319_v54  ;;  %v107_v58 = vsel %vm99_vm2, %v70_v56, %v320_v53 }
  0x89   :  { %191 = vmatmul.f32.gmra.mxu0 %v101_v45  ;;  %220 = vmatmul.f32.gmra.mxu1 %v105_v35 }
  0x8a   :  { %249 = vmatmul.f32.gmra.mxu2 %v101_v45  ;;  %278 = vmatmul.f32.gmra.mxu3 %v105_v35 }
  0x91   :  { %194 = vmatmul.f32.gmra.mxu0 %v102_v50  ;;  %223 = vmatmul.f32.gmra.mxu1 %v106_v27 }
  0x92   :  { %252 = vmatmul.f32.gmra.mxu2 %v102_v50  ;;  %281 = vmatmul.f32.gmra.mxu3 %v106_v27 }
  0x99   :  { %197 = vmatmul.f32.gmra.mxu0 %v103_v57  ;;  %226 = vmatmul.f32.gmra.mxu1 %v107_v58 }
  0x9a   :  { %255 = vmatmul.f32.gmra.mxu2 %v103_v57  ;;  %284 = vmatmul.f32.gmra.mxu3 %v107_v58 }
  0xfe   :  { %v189_v59 = vpop.f32.mrf.mxu0  ;;  %v218_v38 = vpop.f32.mrf.mxu1 }
  0xff   :  { %v219_v60 = vadd.f32 %v218_v38, %v189_v59 }
 0x101   :  { %288 = vst [vmem:[%s635_s4] sm:$0xff] %v219_v60 }
 0x105   :  { %v247_v61 = vpop.f32.mrf.mxu2  ;;  %v276_v62 = vpop.f32.mrf.mxu3 }
 0x106   :  { %v277_v63 = vadd.f32 %v276_v62, %v247_v61  ;;  %v192_v0 = vpop.f32.mrf.mxu0  ;;  %v221_v1 = vpop.f32.mrf.mxu1 }
 0x107   :  { %v222_v2 = vadd.f32 %v221_v1, %v192_v0 }
 0x108   :  { %289 = vst [vmem:[%s635_s4 + $0x8] sm:$0xff] %v277_v63 }
 0x109   :  { %290 = vst [vmem:[%s635_s4 + $0x10] sm:$0xff] %v222_v2 }
 0x10d   :  { %v250_v3 = vpop.f32.mrf.mxu2  ;;  %v279_v4 = vpop.f32.mrf.mxu3 }
 0x10e   :  { %v280_v5 = vadd.f32 %v279_v4, %v250_v3  ;;  %v195_v6 = vpop.f32.mrf.mxu0  ;;  %v224_v7 = vpop.f32.mrf.mxu1 }
 0x10f   :  { %v225_v8 = vadd.f32 %v224_v7, %v195_v6 }
 0x110   :  { %291 = vst [vmem:[%s635_s4 + $0x18] sm:$0xff] %v280_v5 }
 0x111   :  { %292 = vst [vmem:[%s635_s4 + $0x20] sm:$0xff] %v225_v8 }
 0x115   :  { %v253_v9 = vpop.f32.mrf.mxu2  ;;  %v282_v10 = vpop.f32.mrf.mxu3 }
 0x116   :  { %v283_v11 = vadd.f32 %v282_v10, %v253_v9  ;;  %v198_v12 = vpop.f32.mrf.mxu0  ;;  %v227_v13 = vpop.f32.mrf.mxu1 }
 0x117   :  { %v228_v14 = vadd.f32 %v227_v13, %v198_v12 }
 0x118   :  { %293 = vst [vmem:[%s635_s4 + $0x28] sm:$0xff] %v283_v11 }
 0x119   :  { %294 = vst [vmem:[%s635_s4 + $0x30] sm:$0xff] %v228_v14 }
 0x11d   :  { %v256_v15 = vpop.f32.mrf.mxu2  ;;  %v285_v16 = vpop.f32.mrf.mxu3 }
 0x11e   :  { %v286_v17 = vadd.f32 %v285_v16, %v256_v15 }
 0x120   :  { %295 = vst [vmem:[%s635_s4 + $0x38] sm:$0xff] %v286_v17 }

</bundles_post_ra>
